<compile_context>
chip_gen: v7x
topology: tpu7x:2x2x1
jax: 0.10.0
libtpu: 0.0.40
codegen_flags: <defaults>
</compile_context>

<pallas_src>
import math
import functools

import numpy as np
import jax
import jax.numpy as jnp
from jax.experimental import pallas as pl
from jax.experimental.pallas import tpu as pltpu

_LANE = 128
_ROW_ALIGN = 32          # covers sublane packing for f32(8) / bf16(16) / int8,fp8(32)


def _round_down(x, m):
    return (x // m) * m


def _round_up(x, m):
    return -(-x // m) * m


def _sse_partial_kernel(pred_ref, gt_ref, out_ref, *, n_rows, tile_r, mask_rows):
    """Per-sample partial sum-of-squared-error for one (batch-tile, row-chunk).

    pred_ref / gt_ref : (TB, TILE_R, 128) blocks in the *input* dtype.
    out_ref           : (TB, 128) f32 per-sample lane-partial SSE.
    """
    p = pred_ref[...].astype(jnp.float32)
    g = gt_ref[...].astype(jnp.float32)
    diff = p - g
    if mask_rows:
        # Ragged final row-chunk: rows >= n_rows contain undefined block data;
        # zero them *before* squaring so NaN/Inf garbage contributes nothing.
        k = pl.program_id(1)
        row = k * tile_r + jax.lax.broadcasted_iota(jnp.int32, diff.shape, 1)
        diff = jnp.where(row < n_rows, diff, 0.0)
    # Per-sample reduce over the chunk's sublane axis -> (TB, 128) lane partials.
    out_ref[...] = jnp.sum(diff * diff, axis=1)


def _choose_tiles(B, R, itemsize, block_target_bytes):
    """Pick (tb, tile_r): tb*tile_r*128*itemsize ~= block_target_bytes, with
    tb a multiple of 8 (or == B) and tile_r a multiple of 32 (or == R)."""
    rows_budget = max(_ROW_ALIGN, block_target_bytes // (_LANE * itemsize))
    tb = 8 if B >= 8 else B
    per_sample_rows = max(_ROW_ALIGN, _round_down(rows_budget // tb, _ROW_ALIGN))
    if R <= per_sample_rows:
        tile_r = R                                   # whole sample per chunk (full dim OK)
        tb_grow = rows_budget // max(R, 1)           # batch-tile small samples
        if tb_grow >= B:
            tb = B                                   # full batch dim: always OK
        elif B >= 8:
            tb = max(8, _round_down(tb_grow, 8))     # keep full-tile output stores
    else:
        tile_r = per_sample_rows
    # v7x megacore: guarantee >= 2 grid steps along a parallel axis when possible.
    if pl.cdiv(B, tb) * pl.cdiv(R, tile_r) == 1 and R >= 2 * _ROW_ALIGN:
        tile_r = _round_up(pl.cdiv(R, 2), _ROW_ALIGN)
    return tb, tile_r


@functools.partial(
    jax.jit,
    static_argnames=("max_value", "boundary_ignore", "block_target_bytes"))
def psnr_forward(pred, gt, max_value=1.0, boundary_ignore=None,
                 block_target_bytes=4 << 20):
    """Equivalent of PSNR_class.forward(pred, gt) for valid=None.

    pred, gt: (B, C, H, W) arrays (any numeric dtype).
    Returns a scalar: mean of finite per-sample PSNRs (0.0 if none finite).
    """
    # TODO(synk): the `valid`-mask weighted-MSE branch of PixelWiseError is not
    # implemented (only the valid=None path used by PSNR_class.forward).
    if boundary_ignore is not None:
        bi = boundary_ignore
        pred = pred[..., bi:-bi, bi:-bi]
        gt = gt[..., bi:-bi, bi:-bi]

    B = pred.shape[0]
    n_elems = int(np.prod(pred.shape[1:]))  # C*H*W elements per sample

    # Flatten per sample; keep the original dtype in HBM (cast is in-kernel).
    pred_f = pred.reshape(B, n_elems)        # free (contiguous) reshape
    gt_f = gt.reshape(B, n_elems)

    R = pl.cdiv(n_elems, _LANE)              # 128-lane rows per sample
    n_pad = R * _LANE - n_elems
    if n_pad:
        # TODO(synk): non-128-aligned C*H*W still materializes a padded copy of
        # both tensors (one extra HBM read+write each); a manual-DMA flat
        # streaming variant would remove it. Aligned shapes take the zero-copy
        # path. Identical zero-pad in both inputs -> contributes 0 to the SSE.
        pred_f = jnp.pad(pred_f, ((0, 0), (0, n_pad)))
        gt_f = jnp.pad(gt_f, ((0, 0), (0, n_pad)))
    pred_r = pred_f.reshape(B, R, _LANE)
    gt_r = gt_f.reshape(B, R, _LANE)

    itemsize = pred.dtype.itemsize
    tb, tile_r = _choose_tiles(B, R, itemsize, block_target_bytes)
    num_b = pl.cdiv(B, tb)
    num_k = pl.cdiv(R, tile_r)
    mask_rows = (R % tile_r) != 0

    kernel = functools.partial(
        _sse_partial_kernel, n_rows=R, tile_r=tile_r, mask_rows=mask_rows)

    # Explicit VMEM budget: 2 inputs x 2 pipeline buffers x block + out + slack.
    in_block_bytes = tb * tile_r * _LANE * itemsize
    out_block_bytes = tb * _LANE * 4
    vmem_need = 2 * 2 * in_block_bytes + 2 * out_block_bytes + (2 << 20)
    vmem_limit = int(min(max(vmem_need, 24 << 20), 48 << 20))

    cost = pl.CostEstimate(
        flops=3 * B * n_elems,
        transcendentals=0,
        bytes_accessed=2 * B * n_elems * itemsize + B * num_k * _LANE * 4)

    partials = pl.pallas_call(
        kernel,
        out_shape=jax.ShapeDtypeStruct((B, num_k * _LANE), jnp.float32),
        grid_spec=pltpu.PrefetchScalarGridSpec(
            num_scalar_prefetch=0,
            grid=(num_b, num_k),
            in_specs=[
                pl.BlockSpec((tb, tile_r, _LANE), lambda b, k: (b, k, 0)),
                pl.BlockSpec((tb, tile_r, _LANE), lambda b, k: (b, k, 0)),
            ],
            out_specs=pl.BlockSpec((tb, _LANE), lambda b, k: (b, k)),
        ),
        compiler_params=pltpu.CompilerParams(
            dimension_semantics=("parallel", "parallel"),
            vmem_limit_bytes=vmem_limit,
        ),
        cost_estimate=cost,
    )(pred_r, gt_r)

    # Tiny JAX epilogue: per-sample SSE -> MSE -> PSNR, finite filter, mean.
    sse = jnp.sum(partials, axis=1)                          # (B,)
    mse = sse / jnp.float32(n_elems)
    psnr_per_sample = (jnp.float32(20.0 * math.log10(max_value))
                       - 10.0 * jnp.log10(mse))

    # Match PyTorch: drop inf/nan per-sample PSNRs, average the rest, 0 if empty.
    finite = jnp.isfinite(psnr_per_sample)
    n_finite = jnp.sum(finite.astype(jnp.float32))
    total = jnp.sum(jnp.where(finite, psnr_per_sample, 0.0))
    return jnp.where(n_finite > 0, total / jnp.maximum(n_finite, 1.0), 0.0)


def _reference_psnr(pred, gt, max_value=1.0):
    """Pure-numpy reference mirroring the PyTorch module (valid=None path)."""
    pred = np.asarray(pred, dtype=np.float64)
    gt = np.asarray(gt, dtype=np.float64)
    vals = []
    for p, g in zip(pred, gt):
        mse = np.mean((p - g) ** 2)
        with np.errstate(divide="ignore"):
            v = 20.0 * math.log10(max_value) - 10.0 * np.log10(mse)
        if np.isfinite(v):
            vals.append(float(v))
    return 0.0 if not vals else sum(vals) / len(vals)


if __name__ == "__main__":
    key = jax.random.PRNGKey(0)

    def make_pair(k, shape):
        k1, k2 = jax.random.split(k)
        pred = jax.random.uniform(k1, shape, dtype=jnp.float32)
        gt = jnp.clip(pred + 0.05 * jax.random.normal(k2, shape, jnp.float32),
                      0.0, 1.0)
        return pred, gt

    k0, k1, k2, k3 = jax.random.split(key, 4)
    checks = []

    # 1) Main case: B=2, C=4, H=16, W=16 (128-aligned zero-copy path).
    pred, gt = make_pair(k0, (2, 4, 16, 16))
    out = jax.block_until_ready(psnr_forward(pred, gt, max_value=1.0))
    checks.append((float(out), _reference_psnr(pred, gt)))

    # 2) Non-128-multiple C*H*W (padded path).
    pred, gt = make_pair(k1, (3, 3, 7, 9))
    out = jax.block_until_ready(psnr_forward(pred, gt))
    checks.append((float(out), _reference_psnr(pred, gt)))

    # 3) Forced small blocks: ragged final row-chunk (in-kernel mask), tb == B.
    pred, gt = make_pair(k2, (5, 1, 128, 33))
    out = jax.block_until_ready(psnr_forward(pred, gt, block_target_bytes=1 << 17))
    checks.append((float(out), _reference_psnr(pred, gt)))

    # 4) Ragged batch tiling: B=11 with tb=8 (B % tb != 0), clamped output writes.
    pred, gt = make_pair(k3, (11, 1, 64, 64))
    out = jax.block_until_ready(psnr_forward(pred, gt, block_target_bytes=1 << 17))
    checks.append((float(out), _reference_psnr(pred, gt)))

    for got, ref in checks:
        assert abs(got - ref) < 1e-2, (got, ref)
    print("KERNEL_OK")
</pallas_src>

<mosaic_0001>
module attributes {stable_mosaic.version = 11 : i64} {
  func.func @_sse_partial_kernel(%arg0: i32, %arg1: i32, %arg2: memref<2x8x128xf32, #tpu.memory_space<vmem>>, %arg3: memref<2x8x128xf32, #tpu.memory_space<vmem>>, %arg4: memref<2x128xf32, #tpu.memory_space<vmem>>) attributes {dimension_semantics = [#tpu.dimension_semantics<parallel>, #tpu.dimension_semantics<parallel>], iteration_bounds = array<i64: 1, 1>, scalar_prefetch = 0 : i64, scratch_operands = 0 : i64, tpu.core_type = #tpu.core_type<tc>, window_params = [{transform_indices = @transform_0, window_bounds = array<i64: 2, 8, 128>}, {transform_indices = @transform_1, window_bounds = array<i64: 2, 8, 128>}, {transform_indices = @transform_2, window_bounds = array<i64: 2, 128>}]} {
    %c0 = arith.constant 0 : index
    %c0_0 = arith.constant 0 : index
    %c0_1 = arith.constant 0 : index
    %0 = vector.load %arg2[%c0, %c0_0, %c0_1] : memref<2x8x128xf32, #tpu.memory_space<vmem>>, vector<2x8x128xf32>
    %c0_2 = arith.constant 0 : index
    %c0_3 = arith.constant 0 : index
    %c0_4 = arith.constant 0 : index
    %1 = vector.load %arg3[%c0_2, %c0_3, %c0_4] : memref<2x8x128xf32, #tpu.memory_space<vmem>>, vector<2x8x128xf32>
    %2 = arith.subf %0, %1 : vector<2x8x128xf32>
    %3 = arith.mulf %2, %2 : vector<2x8x128xf32>
    %cst = arith.constant dense<0.000000e+00> : vector<2x128xf32>
    %4 = vector.multi_reduction <add>, %3, %cst [1] : vector<2x8x128xf32> to vector<2x128xf32>
    %c0_5 = arith.constant 0 : index
    %c0_6 = arith.constant 0 : index
    %5 = vector.load %arg4[%c0_5, %c0_6] : memref<2x128xf32, #tpu.memory_space<vmem>>, vector<2x128xf32>
    tpu.vector_store %arg4[%c0_5, %c0_6], %4 {strides = array<i32>} : memref<2x128xf32, #tpu.memory_space<vmem>>, vector<2x128xf32>,
    return
  }
  func.func @transform_0(%arg0: i32, %arg1: i32) -> (i32, i32, i32) {
    %c0_i32 = arith.constant 0 : i32
    %c0_i32_0 = arith.constant 0 : i32
    return %arg0, %arg1, %c0_i32 : i32, i32, i32
  }
  func.func @transform_1(%arg0: i32, %arg1: i32) -> (i32, i32, i32) {
    %c0_i32 = arith.constant 0 : i32
    %c0_i32_0 = arith.constant 0 : i32
    return %arg0, %arg1, %c0_i32 : i32, i32, i32
  }
  func.func @transform_2(%arg0: i32, %arg1: i32) -> (i32, i32) {
    %c0_i32 = arith.constant 0 : i32
    return %arg0, %arg1 : i32, i32
  }
}

</mosaic_0001>

<bundles_post_ra>
// kernel: psnr_forward.1
= control target key start
LH: loop header
LB: loop body
LE: loop exit
PB: predicated region body
PF: predicated region fallthrough
CT: control target
= control target key end

     0   :  { %vm33_vm0 = vcmask 1041409   ;;  %s71_s0 = inlined_call_operand.vmem [shape: f32[2,8,128], index: 0, kind: input, shape index: {}]   ;;  %s72_s1 = inlined_call_operand.vmem [shape: f32[2,8,128], index: 1, kind: input, shape index: {}]   ;;  %s73_s2 = inlined_call_operand.vmem [shape: f32[2,128], index: 2, kind: output, shape index: {}]  }
   0x1   :  { %v11_v0 = vld [vmem:[%s71_s0] sm:$0xff]  ;;  %v12_v1 = vld [vmem:[%s71_s0 + $0x8] sm:$0xff] }
   0x2   :  { %v13_v2 = vld [vmem:[%s72_s1] sm:$0xff]  ;;  %v14_v3 = vld [vmem:[%s72_s1 + $0x8] sm:$0xff] }
   0x3   :  { %v15_v4 = vsub.f32 %v11_v0, %v13_v2  ;;  %v16_v5 = vsub.f32 %v12_v1, %v14_v3 }
   0x5   :  { %v17_v6 = vmul.f32 %v15_v4, %v15_v4  ;;  %v18_v7 = vmul.f32 %v16_v5, %v16_v5 }
   0x7   :  { %v19_v8 = vrot.slane %v17_v6, 4  ;;  %v25_v9 = vrot.slane %v18_v7, 4 }
   0x9   :  { %v20_v10 = vadd.f32 %v19_v8, %v17_v6  ;;  %v26_v11 = vadd.f32 %v25_v9, %v18_v7 }
   0xb   :  { %v21_v12 = vrot.slane %v20_v10, 2  ;;  %v27_v13 = vrot.slane %v26_v11, 2 }
   0xd   :  { %v22_v14 = vadd.f32 %v21_v12, %v20_v10  ;;  %v28_v15 = vadd.f32 %v27_v13, %v26_v11 }
   0xf   :  { %v23_v16 = vrot.slane %v22_v14, 1  ;;  %v29_v17 = vrot.slane %v28_v15, 1 }
  0x11   :  { %v24_v18 = vadd.f32 %v23_v16, %v22_v14  ;;  %v30_v19 = vadd.f32 %v29_v17, %v28_v15 }
  0x13   :  { %v34_v20 = vsel %vm33_vm0, %v30_v19, %v24_v18 }
  0x14   :  { %36 = vst [vmem:[%s73_s2] sm:$0x3] %v34_v20 }

</bundles_post_ra>
